<compile_context>
chip_gen: v7x
topology: tpu7x:2x2x1
jax: 0.10.0
libtpu: 0.0.40
codegen_flags: <defaults>
</compile_context>

<pallas_src>
import functools
from typing import NamedTuple, Optional

import jax
import jax.numpy as jnp
from jax.experimental import pallas as pl
from jax.experimental.pallas import tpu as pltpu


_LANE_ALIGN = 256  # K and N are padded once, at weight-prep time, to this multiple.


def _round_up(x: int, m: int) -> int:
    return ((x + m - 1) // m) * m


def _sublane_multiple(dtype) -> int:
    # Native packed sublane tile: f32 -> 8, bf16 -> 16, int8/fp8 -> 32.
    return {1: 32, 2: 16}.get(jnp.dtype(dtype).itemsize, 8)


def _pick_tile(dim: int, target: int, *, min_tile: int = _LANE_ALIGN,
               keep_two_parallel: bool = False) -> int:
    """Largest power-of-two-scaled tile <= target that divides `dim`.

    If keep_two_parallel, prefer a tile leaving >= 2 grid iterations on this
    (parallel) axis so v7x's second TensorCore gets work.
    """
    best = None
    c = target
    while c >= min_tile:
        if dim % c == 0:
            if not keep_two_parallel or dim // c >= 2:
                return c
            if best is None:
                best = c
        c //= 2
    return best if best is not None else dim


# ----------------------------------------------------------------------------
# Kernels
# ----------------------------------------------------------------------------
def _linear_kernel_scratch(*refs, add_bias: bool):
    """Accumulate in an f32 VMEM scratch; cast to o_ref dtype on the last k step."""
    if add_bias:
        x_ref, w_ref, b_ref, o_ref, acc_ref = refs
    else:
        x_ref, w_ref, o_ref, acc_ref = refs
        b_ref = None
    k = pl.program_id(2)

    @pl.when(k == 0)
    def _init():
        acc_ref[...] = jnp.zeros_like(acc_ref)

    acc_ref[...] += jnp.dot(x_ref[...], w_ref[...], preferred_element_type=jnp.float32)

    @pl.when(k == pl.num_programs(2) - 1)
    def _finalize():
        acc = acc_ref[...]
        if add_bias:
            acc = acc + b_ref[...].astype(jnp.float32)  # once per tile, in f32
        o_ref[...] = acc.astype(o_ref.dtype)


def _linear_kernel_inplace(*refs, add_bias: bool):
    """f32 output: accumulate directly into o_ref (resident across k), no scratch."""
    if add_bias:
        x_ref, w_ref, b_ref, o_ref = refs
    else:
        x_ref, w_ref, o_ref = refs
        b_ref = None
    k = pl.program_id(2)
    part = jnp.dot(x_ref[...], w_ref[...], preferred_element_type=jnp.float32)

    @pl.when(k == 0)
    def _first():
        o_ref[...] = part

    @pl.when(k > 0)
    def _rest():
        o_ref[...] += part

    if add_bias:
        @pl.when(k == pl.num_programs(2) - 1)
        def _bias():
            o_ref[...] += b_ref[...].astype(o_ref.dtype)


# ----------------------------------------------------------------------------
# One-time weight preparation (do at weight-load time, NOT per forward)
# ----------------------------------------------------------------------------
class PreparedColumnParallelLinear(NamedTuple):
    w_kn: jax.Array                   # [Kp, Np] transposed, padded, activation dtype
    bias_2d: Optional[jax.Array]      # [1, Np] padded bias, or None
    bias: Optional[jax.Array]         # original bias (returned when skip_bias_add)
    in_size: int
    out_size: int


def prepare_column_parallel_linear(weight, bias=None, *, activation_dtype=None):
    """Transpose weight to [K, N], pad K/N to lane alignment, cast to the
    activation dtype.  Call once per layer; reuse the result every forward."""
    out_size, in_size = weight.shape
    if activation_dtype is None:
        activation_dtype = weight.dtype
    kp = _round_up(in_size, _LANE_ALIGN)
    np_ = _round_up(out_size, _LANE_ALIGN)
    w_kn = jnp.transpose(weight).astype(activation_dtype)
    if (kp, np_) != (in_size, out_size):
        w_kn = jnp.pad(w_kn, ((0, kp - in_size), (0, np_ - out_size)))
    bias_2d = None
    if bias is not None:
        bias_2d = jnp.pad(bias, (0, np_ - out_size)).reshape(1, np_)
    return PreparedColumnParallelLinear(w_kn, bias_2d, bias, in_size, out_size)


# ----------------------------------------------------------------------------
# Forward
# ----------------------------------------------------------------------------
def column_parallel_linear_forward(x, prepared: PreparedColumnParallelLinear, *,
                                   skip_bias_add=False, gather_output=False):
    """Pallas equivalent of ColumnParallelLinear.forward (single TP partition).

    x: [..., input_size].  Returns (output, output_bias) like the PyTorch module.
    """
    in_size, out_size = prepared.in_size, prepared.out_size
    kp, np_ = prepared.w_kn.shape
    assert x.shape[-1] == in_size

    lead_shape = x.shape[:-1]
    out_dtype = x.dtype
    x2d = x.reshape(-1, in_size)
    if x2d.dtype != prepared.w_kn.dtype:
        # Keep the MXU on the fast same-dtype path (x is the cheap side to cast).
        x2d = x2d.astype(prepared.w_kn.dtype)
    m = x2d.shape[0]

    itemsize = jnp.dtype(x2d.dtype).itemsize
    out_itemsize = jnp.dtype(out_dtype).itemsize
    sub = _sublane_multiple(x2d.dtype)

    # ---- regime-aware tile selection ------------------------------------
    decode = m <= 256
    if decode:
        # Decode is weight-bandwidth bound: big weight tiles, tiny row tile.
        tm = _round_up(max(m, 1), sub)
        tn = _pick_tile(np_, 2048, keep_two_parallel=True)
        tk = _pick_tile(kp, 2048)
    else:
        # Prefill: full-height LHS tiles, wide N tiles to cut x re-streaming.
        tm = 256
        tn = _pick_tile(np_, 2048, keep_two_parallel=True)
        tk = _pick_tile(kp, 1024)

    use_scratch = out_dtype != jnp.float32
    add_bias = (prepared.bias_2d is not None) and (not skip_bias_add)
    bias_itemsize = (jnp.dtype(prepared.bias_2d.dtype).itemsize
                     if prepared.bias_2d is not None else 0)

    def _vmem_need(tk_, tn_):
        w = 2 * tk_ * tn_ * itemsize            # double-buffered weight tile
        xb = 2 * tm * tk_ * itemsize            # double-buffered x tile
        ob = 2 * tm * tn_ * out_itemsize        # double-buffered output tile
        acc = tm * tn_ * 4 if use_scratch else 0
        bb = 2 * tn_ * bias_itemsize if add_bias else 0
        return w + xb + ob + acc + bb

    budget = 28 << 20  # safe on v5e/v6e/v7x once vmem_limit_bytes is raised
    while _vmem_need(tk, tn) > budget and tk > _LANE_ALIGN and kp % (tk // 2) == 0:
        tk //= 2
    while _vmem_need(tk, tn) > budget and tn > _LANE_ALIGN and np_ % (tn // 2) == 0:
        tn //= 2

    mp = _round_up(m, tm)
    xp = x2d
    if (mp, kp) != (m, in_size):
        xp = jnp.pad(x2d, ((0, mp - m), (0, kp - in_size)))

    grid = (mp // tm, np_ // tn, kp // tk)

    in_specs = [
        pl.BlockSpec((tm, tk), lambda i, j, k: (i, k)),   # x tile
        pl.BlockSpec((tk, tn), lambda i, j, k: (k, j)),   # weight tile (streamed)
    ]
    operands = [xp, prepared.w_kn]
    if add_bias:
        in_specs.append(pl.BlockSpec((1, tn), lambda i, j, k: (0, j)))
        operands.append(prepared.bias_2d)

    if use_scratch:
        kernel = functools.partial(_linear_kernel_scratch, add_bias=add_bias)
        scratch_shapes = [pltpu.VMEM((tm, tn), jnp.float32)]
    else:
        kernel = functools.partial(_linear_kernel_inplace, add_bias=add_bias)
        scratch_shapes = []

    vmem_limit = int(min(max(_vmem_need(tk, tn) + (8 << 20), 32 << 20), 56 << 20))

    w_itemsize = jnp.dtype(prepared.w_kn.dtype).itemsize
    cost = pl.CostEstimate(
        flops=2 * m * out_size * in_size,
        transcendentals=0,
        bytes_accessed=(
            kp * np_ * w_itemsize * (mp // tm)      # weight streamed once per M tile
            + mp * kp * itemsize * (np_ // tn)      # x streamed once per N tile
            + mp * np_ * out_itemsize               # output written once
            + (np_ * bias_itemsize * (mp // tm) if add_bias else 0)
        ),
    )

    out_padded = pl.pallas_call(
        kernel,
        out_shape=jax.ShapeDtypeStruct((mp, np_), out_dtype),
        grid_spec=pltpu.PrefetchScalarGridSpec(
            num_scalar_prefetch=0,
            grid=grid,
            in_specs=in_specs,
            out_specs=pl.BlockSpec((tm, tn), lambda i, j, k: (i, j)),
            scratch_shapes=scratch_shapes,
        ),
        compiler_params=pltpu.CompilerParams(
            dimension_semantics=("parallel", "parallel", "arbitrary"),
            vmem_limit_bytes=vmem_limit,
        ),
        cost_estimate=cost,
    )(*operands)

    out2d = out_padded[:m, :out_size]
    output = out2d.reshape(*lead_shape, out_size)

    # TODO(synk): gather_output=True needs tensor_model_parallel_all_gather across
    # TP ranks; this single-partition kernel returns the local shard.
    del gather_output

    output_bias = prepared.bias if skip_bias_add else None
    return output, output_bias


def column_parallel_linear(x, weight, bias=None, *, skip_bias_add=False,
                           gather_output=False):
    """One-shot convenience path (prep + forward).  For repeated forwards call
    prepare_column_parallel_linear() once and reuse it — that hoists the
    transpose/pad/cast (a full HBM pass over the weight) out of the hot path."""
    prepared = prepare_column_parallel_linear(weight, bias, activation_dtype=x.dtype)
    return column_parallel_linear_forward(
        x, prepared, skip_bias_add=skip_bias_add, gather_output=gather_output)


if __name__ == "__main__":
    # Small, deterministic example consistent with the module's forward.
    batch, seq = 2, 8
    input_size, output_size = 32, 48

    key = jax.random.PRNGKey(0)
    kx, kw, kb = jax.random.split(key, 3)
    x = jax.random.normal(kx, (batch, seq, input_size), dtype=jnp.float32)
    weight = jax.random.normal(kw, (output_size, input_size), dtype=jnp.float32) * 0.05
    bias = jax.random.normal(kb, (output_size,), dtype=jnp.float32) * 0.1

    ref_nobias = jnp.einsum("bsk,nk->bsn", x, weight)
    ref = ref_nobias + bias

    # Prepared (weight-load-time) path: default bias add, output_bias is None.
    prepared = prepare_column_parallel_linear(weight, bias, activation_dtype=x.dtype)
    out, out_bias = column_parallel_linear_forward(x, prepared, skip_bias_add=False)
    out = jax.block_until_ready(out)
    assert out.shape == (batch, seq, output_size)
    assert out_bias is None
    assert jnp.allclose(out, ref, atol=1e-4, rtol=1e-4)

    # skip_bias_add path: bias returned, not added.
    out2, out_bias2 = column_parallel_linear_forward(x, prepared, skip_bias_add=True)
    out2 = jax.block_until_ready(out2)
    assert out_bias2 is bias
    assert jnp.allclose(out2, ref_nobias, atol=1e-4, rtol=1e-4)

    # No-bias layer: bias operand dropped from the kernel entirely.
    prepared_nb = prepare_column_parallel_linear(weight, None, activation_dtype=x.dtype)
    out_nb, out_bias_nb = column_parallel_linear_forward(x, prepared_nb)
    out_nb = jax.block_until_ready(out_nb)
    assert out_bias_nb is None
    assert jnp.allclose(out_nb, ref_nobias, atol=1e-4, rtol=1e-4)

    # Decode-shaped input (M=1) exercises the padding / small-tm path.
    x1 = jax.random.normal(kx, (1, input_size), dtype=jnp.float32)
    out3, _ = column_parallel_linear_forward(x1, prepared)
    out3 = jax.block_until_ready(out3)
    assert jnp.allclose(out3, x1 @ weight.T + bias, atol=1e-4, rtol=1e-4)

    # bf16 decode path: 16-row sublane clamp + f32 scratch accumulator kernel.
    x_bf = x1.astype(jnp.bfloat16)
    prepared_bf = prepare_column_parallel_linear(weight, bias,
                                                 activation_dtype=jnp.bfloat16)
    out4, _ = column_parallel_linear_forward(x_bf, prepared_bf)
    out4 = jax.block_until_ready(out4)
    ref4 = x_bf.astype(jnp.float32) @ weight.T + bias
    assert out4.dtype == jnp.bfloat16
    assert jnp.allclose(out4.astype(jnp.float32), ref4, atol=5e-2, rtol=5e-2)

    # Convenience one-shot wrapper still matches.
    out5, _ = column_parallel_linear(x, weight, bias)
    out5 = jax.block_until_ready(out5)
    assert jnp.allclose(out5, ref, atol=1e-4, rtol=1e-4)

    print("KERNEL_OK")
</pallas_src>

<mosaic_0001>
module attributes {stable_mosaic.version = 11 : i64} {
  func.func @_linear_kernel_inplace(%arg0: i32, %arg1: i32, %arg2: i32, %arg3: memref<16x256xf32, #tpu.memory_space<vmem>>, %arg4: memref<256x256xf32, #tpu.memory_space<vmem>>, %arg5: memref<1x256xf32, #tpu.memory_space<vmem>>, %arg6: memref<16x256xf32, #tpu.memory_space<vmem>>) attributes {dimension_semantics = [#tpu.dimension_semantics<parallel>, #tpu.dimension_semantics<parallel>, #tpu.dimension_semantics<arbitrary>], iteration_bounds = array<i64: 1, 1, 1>, scalar_prefetch = 0 : i64, scratch_operands = 0 : i64, tpu.core_type = #tpu.core_type<tc>, window_params = [{transform_indices = @transform_0, window_bounds = array<i64: 16, 256>}, {transform_indices = @transform_1, window_bounds = array<i64: 256, 256>}, {transform_indices = @transform_2, window_bounds = array<i64: 1, 256>}, {transform_indices = @transform_3, window_bounds = array<i64: 16, 256>}]} {
    %c0 = arith.constant 0 : index
    %c0_0 = arith.constant 0 : index
    %0 = vector.load %arg3[%c0, %c0_0] : memref<16x256xf32, #tpu.memory_space<vmem>>, vector<16x256xf32>
    %c0_1 = arith.constant 0 : index
    %c0_2 = arith.constant 0 : index
    %1 = vector.load %arg4[%c0_1, %c0_2] : memref<256x256xf32, #tpu.memory_space<vmem>>, vector<256x256xf32>
    %cst = arith.constant dense<0.000000e+00> : vector<16x256xf32>
    %2 = tpu.matmul %0, %1, %cst {dimension_numbers = #tpu.dot_dimension_numbers<[1], [0], [0], [1], [0, 0, 1, 1], [], []>} : vector<16x256xf32>, vector<256x256xf32>, vector<16x256xf32> -> vector<16x256xf32>
    %c0_i32 = arith.constant 0 : i32
    %3 = arith.cmpi eq, %arg2, %c0_i32 : i32
    %4 = arith.extui %3 : i1 to i32
    %c0_i32_3 = arith.constant 0 : i32
    %5 = arith.cmpi ne, %4, %c0_i32_3 : i32
    scf.if %5 {
      %c0_8 = arith.constant 0 : index
      %c0_9 = arith.constant 0 : index
      %12 = vector.load %arg6[%c0_8, %c0_9] : memref<16x256xf32, #tpu.memory_space<vmem>>, vector<16x256xf32>
      tpu.vector_store %arg6[%c0_8, %c0_9], %2 {strides = array<i32>} : memref<16x256xf32, #tpu.memory_space<vmem>>, vector<16x256xf32>,
    } else {
    }
    %c0_i32_4 = arith.constant 0 : i32
    %6 = arith.cmpi sgt, %arg2, %c0_i32_4 : i32
    %7 = arith.extui %6 : i1 to i32
    %c0_i32_5 = arith.constant 0 : i32
    %8 = arith.cmpi ne, %7, %c0_i32_5 : i32
    scf.if %8 {
      %c0_8 = arith.constant 0 : index
      %c0_9 = arith.constant 0 : index
      %12 = vector.load %arg6[%c0_8, %c0_9] : memref<16x256xf32, #tpu.memory_space<vmem>>, vector<16x256xf32>
      %13 = arith.addf %12, %2 : vector<16x256xf32>
      %c0_10 = arith.constant 0 : index
      %c0_11 = arith.constant 0 : index
      %14 = vector.load %arg6[%c0_10, %c0_11] : memref<16x256xf32, #tpu.memory_space<vmem>>, vector<16x256xf32>
      tpu.vector_store %arg6[%c0_10, %c0_11], %13 {strides = array<i32>} : memref<16x256xf32, #tpu.memory_space<vmem>>, vector<16x256xf32>,
    } else {
    }
    %c0_i32_6 = arith.constant 0 : i32
    %9 = arith.cmpi eq, %arg2, %c0_i32_6 : i32
    %10 = arith.extui %9 : i1 to i32
    %c0_i32_7 = arith.constant 0 : i32
    %11 = arith.cmpi ne, %10, %c0_i32_7 : i32
    scf.if %11 {
      %c0_8 = arith.constant 0 : index
      %c0_9 = arith.constant 0 : index
      %12 = vector.load %arg6[%c0_8, %c0_9] : memref<16x256xf32, #tpu.memory_space<vmem>>, vector<16x256xf32>
      %c0_10 = arith.constant 0 : index
      %c0_11 = arith.constant 0 : index
      %13 = vector.load %arg5[%c0_10, %c0_11] : memref<1x256xf32, #tpu.memory_space<vmem>>, vector<1x256xf32>
      %14 = vector.broadcast %13 : vector<1x256xf32> to vector<16x256xf32>
      %15 = arith.addf %12, %14 : vector<16x256xf32>
      %c0_12 = arith.constant 0 : index
      %c0_13 = arith.constant 0 : index
      %16 = vector.load %arg6[%c0_12, %c0_13] : memref<16x256xf32, #tpu.memory_space<vmem>>, vector<16x256xf32>
      tpu.vector_store %arg6[%c0_12, %c0_13], %15 {strides = array<i32>} : memref<16x256xf32, #tpu.memory_space<vmem>>, vector<16x256xf32>,
    } else {
    }
    return
  }
  func.func @transform_0(%arg0: i32, %arg1: i32, %arg2: i32) -> (i32, i32) {
    %c0_i32 = arith.constant 0 : i32
    return %arg0, %arg2 : i32, i32
  }
  func.func @transform_1(%arg0: i32, %arg1: i32, %arg2: i32) -> (i32, i32) {
    %c0_i32 = arith.constant 0 : i32
    return %arg2, %arg1 : i32, i32
  }
  func.func @transform_2(%arg0: i32, %arg1: i32, %arg2: i32) -> (i32, i32) {
    %c0_i32 = arith.constant 0 : i32
    %c0_i32_0 = arith.constant 0 : i32
    return %c0_i32, %arg1 : i32, i32
  }
  func.func @transform_3(%arg0: i32, %arg1: i32, %arg2: i32) -> (i32, i32) {
    %c0_i32 = arith.constant 0 : i32
    return %arg0, %arg1 : i32, i32
  }
}

</mosaic_0001>

<bundles_post_ra>
// kernel: tpu_custom_call.1
= control target key start
LH: loop header
LB: loop body
LE: loop exit
PB: predicated region body
PF: predicated region fallthrough
CT: control target
= control target key end

     0   :  { %8 = vsyncpa [#allocation3], 0  ;;  %s503_s0 = inlined_call_operand.hbm [shape: f32[16,256], index: 0, kind: input, shape index: {}]   ;;  %s504_s1 = inlined_call_operand.hbm [shape: f32[256,256], index: 1, kind: input, shape index: {}]   ;;  %s505_s2 = inlined_call_operand.vmem [shape: f32[1,256], index: 2, kind: input, shape index: {}]   ;;  %s506_s3 = inlined_call_operand.hbm [shape: f32[16,256], index: 3, kind: output, shape index: {}]  }
   0x1   :  { %9 = vsyncpa [#allocation6], 0 }
   0x2   :  { %10 = vsyncpa [#allocation4], 0  ;;  %s430_s12 = smov [#allocation2]   ;;  %s358_s16 = scalar_lea.hbm %s503_s0, 512 }
   0x3   :  { %s16_s13 = sshll.u32 %s430_s12, 4  ;;  %p359_p0 = scmp.ne.s32.totalorder %s503_s0, %s358_s16  ;;  %s17_s13 = int_to_ptr.vmem [resolvable:$true] %s16_s13 }
   0x4   :  { %p362_p1 = scmp.lt.u32.totalorder %s358_s16, %s503_s0 }
   0x6   :  { %p364_p2 = pnand %p362_p1, %p359_p0 }
   0x8   :  { %367 = shalt.err (!%p364_p2)
}
   0x9   :  { %s368_s21 = scalar_lea.vmem %s17_s13, 512  ;;  %p373_p4 = scmp.lt.s32.totalorder %s17_s13, %s17_s13 }
   0xa   :  { %p369_p3 = scmp.ne.s32.totalorder %s17_s13, %s368_s21  ;;  %p374_p5 = scmp.lt.s32.totalorder %s368_s21, %s368_s21 }
   0xc   :  { %p375_p6 = por %p374_p5, %p373_p4 }
   0xe   :  { %p376_p7 = pnand %p375_p6, %p369_p3 }
  0x10   :  { %379 = shalt.err (!%p376_p7)
}
  0x11   :  { %s431_s22 = smov 256   ;;  %s432_s23 = smov 16  }
  0x12   :  { %22 = dma.hbm_to_vmem [thread:$0]  %s503_s0, 512, %s17_s13, [#allocation3], %s431_s22, %s431_s22, %s432_s23  }
  0x13   :  { %s433_s26 = smov [#allocation5]   ;;  %s380_s30 = scalar_lea.hbm %s504_s1, 8192 }
  0x14   :  { %s28_s27 = sshll.u32 %s433_s26, 4  ;;  %p381_p8 = scmp.ne.s32.totalorder %s504_s1, %s380_s30  ;;  %s29_s27 = int_to_ptr.vmem [resolvable:$true] %s28_s27 }
  0x15   :  { %p384_p9 = scmp.lt.u32.totalorder %s380_s30, %s504_s1 }
  0x17   :  { %p386_p10 = pnand %p384_p9, %p381_p8 }
  0x19   :  { %389 = shalt.err (!%p386_p10)
}
  0x1a   :  { %s390_s8 = scalar_lea.vmem %s29_s27, 8192  ;;  %p395_p12 = scmp.lt.s32.totalorder %s29_s27, %s29_s27 }
  0x1b   :  { %p391_p11 = scmp.ne.s32.totalorder %s29_s27, %s390_s8  ;;  %p396_p13 = scmp.lt.s32.totalorder %s390_s8, %s390_s8 }
  0x1d   :  { %p397_p0 = por %p396_p13, %p395_p12 }
  0x1f   :  { %p398_p1 = pnand %p397_p0, %p391_p11 }
  0x21   :  { %401 = shalt.err (!%p398_p1)
}
  0x22   :  { %34 = dma.hbm_to_vmem [thread:$0]  %s504_s1, 8192, %s29_s27, [#allocation6], %s431_s22, %s431_s22, %s432_s23  }
  0x23   :  { %424 = dma.done.wait [#allocation3], 512  }
  0x24   :  { %425 = vsyncadd [#allocation3], 4294966784 }
  0x25   :  { %426 = dma.done.wait [#allocation6], 8192  }
  0x26   :  { %427 = vsyncadd [#allocation6], 4294959104  ;;  %v48_v0 = vld [vmem:[#allocation5 + $0x8] sm:$0xff]  ;;  %v50_v1 = vld [vmem:[#allocation5 + $0x18] sm:$0xff]  ;;  %s434_s11 = smov [#allocation7]  }
  0x27   :  { %v47_v2 = vld [vmem:[#allocation5] sm:$0xff]  ;;  %v257_v3 = vpack.c.bf16 %v50_v1, %v48_v0  ;;  %v49_v4 = vld [vmem:[#allocation5 + $0x10] sm:$0xff]  ;;  %v52_v5 = vld [vmem:[#allocation5 + $0x28] sm:$0xff]  ;;  %s244_s12 = sshll.u32 %s434_s11, 4  ;;  %s245_s12 = int_to_ptr.vmem [resolvable:$true] %s244_s12 }
  0x28   :  { %v54_v6 = vld [vmem:[#allocation5 + $0x38] sm:$0xff]  ;;  %v259_v7 = vpack.c.bf16 %v49_v4, %v47_v2  ;;  %v51_v9 = vld [vmem:[#allocation5 + $0x20] sm:$0xff]  ;;  %v53_v10 = vld [vmem:[#allocation5 + $0x30] sm:$0xff]  ;;  %s402_s13 = scalar_lea.vmem %s245_s12, 512  ;;  %p407_p3 = scmp.lt.s32.totalorder %s245_s12, %s245_s12 }
  0x29   :  { %v261_v8 = vpack.c.bf16 %v54_v6, %v52_v5  ;;  %v56_v11 = vld [vmem:[#allocation5 + $0x48] sm:$0xff]  ;;  %258 = vmatprep.subr.bf16.mxu0 %v257_v3  ;;  %321 = vmatprep.subr.bf16.mxu1 %v257_v3  ;;  %v58_v12 = vld [vmem:[#allocation5 + $0x58] sm:$0xff]  ;;  %v263_v13 = vpack.c.bf16 %v53_v10, %v51_v9  ;;  %v55_v15 = vld [vmem:[#allocation5 + $0x40] sm:$0xff]  ;;  %p403_p2 = scmp.ne.s32.totalorder %s245_s12, %s402_s13  ;;  %p408_p4 = scmp.lt.s32.totalorder %s402_s13, %s402_s13 }
  0x2a   :  { %260 = vmatpush1.bf16.msra.mxu0 %v259_v7  ;;  %337 = vmatpush1.bf16.msra.mxu1 %v259_v7  ;;  %v265_v14 = vpack.c.bf16 %v58_v12, %v56_v11  ;;  %v57_v16 = vld [vmem:[#allocation5 + $0x50] sm:$0xff]  ;;  %v60_v17 = vld [vmem:[#allocation5 + $0x68] sm:$0xff]  ;;  %v62_v18 = vld [vmem:[#allocation5 + $0x78] sm:$0xff] }
  0x2b   :  { %262 = vmatprep.subr.bf16.mxu0 %v261_v8  ;;  %322 = vmatprep.subr.bf16.mxu1 %v261_v8  ;;  %v267_v19 = vpack.c.bf16 %v57_v16, %v55_v15  ;;  %v269_v20 = vpack.c.bf16 %v62_v18, %v60_v17  ;;  %v59_v21 = vld [vmem:[#allocation5 + $0x60] sm:$0xff]  ;;  %v61_v22 = vld [vmem:[#allocation5 + $0x70] sm:$0xff]  ;;  %v64_v23 = vld [vmem:[#allocation5 + $0x88] sm:$0xff]  ;;  %p409_p5 = por %p408_p4, %p407_p3 }
  0x2c   :  { %v66_v24 = vld [vmem:[#allocation5 + $0x98] sm:$0xff]  ;;  %v271_v25 = vpack.c.bf16 %v61_v22, %v59_v21  ;;  %v63_v27 = vld [vmem:[#allocation5 + $0x80] sm:$0xff]  ;;  %v65_v28 = vld [vmem:[#allocation5 + $0x90] sm:$0xff] }
  0x2d   :  { %v273_v26 = vpack.c.bf16 %v66_v24, %v64_v23  ;;  %v68_v29 = vld [vmem:[#allocation5 + $0xa8] sm:$0xff]  ;;  %v70_v30 = vld [vmem:[#allocation5 + $0xb8] sm:$0xff]  ;;  %v275_v31 = vpack.c.bf16 %v65_v28, %v63_v27  ;;  %v67_v33 = vld [vmem:[#allocation5 + $0xa0] sm:$0xff]  ;;  %p410_p6 = pnand %p409_p5, %p403_p2 }
  0x2e   :  { %264 = vmatpush1.bf16.msra.mxu0 %v263_v13  ;;  %338 = vmatpush1.bf16.msra.mxu1 %v263_v13  ;;  %v277_v32 = vpack.c.bf16 %v70_v30, %v68_v29  ;;  %v69_v34 = vld [vmem:[#allocation5 + $0xb0] sm:$0xff]  ;;  %v72_v35 = vld [vmem:[#allocation5 + $0xc8] sm:$0xff]  ;;  %v74_v36 = vld [vmem:[#allocation5 + $0xd8] sm:$0xff] }
  0x2f   :  { %266 = vmatprep.subr.bf16.mxu0 %v265_v14  ;;  %323 = vmatprep.subr.bf16.mxu1 %v265_v14  ;;  %v279_v37 = vpack.c.bf16 %v69_v34, %v67_v33  ;;  %v71_v38 = vld [vmem:[#allocation5 + $0xc0] sm:$0xff]  ;;  %v281_v39 = vpack.c.bf16 %v74_v36, %v72_v35  ;;  %v73_v40 = vld [vmem:[#allocation5 + $0xd0] sm:$0xff]  ;;  %v44_v41 = vld [vmem:[#allocation2 + $0x8] sm:$0xff]  ;;  %v221_v36 = vlaneseq }
  0x30   :  { %v46_v42 = vld [vmem:[#allocation2 + $0x18] sm:$0xff]  ;;  %v76_v43 = vld [vmem:[#allocation5 + $0xe8] sm:$0xff]  ;;  %175 = vmatprep.mubr.f32.mxu0 %v44_v41  ;;  %v283_v45 = vpack.c.bf16 %v73_v40, %v71_v38  ;;  %v75_v47 = vld [vmem:[#allocation5 + $0xe0] sm:$0xff] }
  0x31   :  { %v78_v44 = vld [vmem:[#allocation5 + $0xf8] sm:$0xff]  ;;  %181 = vmatprep.mubr.f32.mxu1 %v46_v42  ;;  %v77_v48 = vld [vmem:[#allocation5 + $0xf0] sm:$0xff]  ;;  %v80_v49 = vld [vmem:[#allocation5 + $0x108] sm:$0xff] }
  0x32   :  { %268 = vmatpush1.bf16.msra.mxu0 %v267_v19  ;;  %339 = vmatpush1.bf16.msra.mxu1 %v267_v19  ;;  %v285_v46 = vpack.c.bf16 %v78_v44, %v76_v43  ;;  %v82_v50 = vld [vmem:[#allocation5 + $0x118] sm:$0xff]  ;;  %v287_v51 = vpack.c.bf16 %v77_v48, %v75_v47  ;;  %v79_v53 = vld [vmem:[#allocation5 + $0x100] sm:$0xff]  ;;  %v81_v54 = vld [vmem:[#allocation5 + $0x110] sm:$0xff] }
  0x33   :  { %270 = vmatprep.subr.bf16.mxu0 %v269_v20  ;;  %324 = vmatprep.subr.bf16.mxu1 %v269_v20  ;;  %v289_v52 = vpack.c.bf16 %v82_v50, %v80_v49  ;;  %v84_v55 = vld [vmem:[#allocation5 + $0x128] sm:$0xff]  ;;  %v86_v56 = vld [vmem:[#allocation5 + $0x138] sm:$0xff]  ;;  %v291_v57 = vpack.c.bf16 %v81_v54, %v79_v53  ;;  %v83_v59 = vld [vmem:[#allocation5 + $0x120] sm:$0xff] }
  0x34   :  { %v293_v58 = vpack.c.bf16 %v86_v56, %v84_v55  ;;  %v85_v60 = vld [vmem:[#allocation5 + $0x130] sm:$0xff]  ;;  %v88_v61 = vld [vmem:[#allocation5 + $0x148] sm:$0xff]  ;;  %v90_v62 = vld [vmem:[#allocation5 + $0x158] sm:$0xff] }
  0x35   :  { %v295_v63 = vpack.c.bf16 %v85_v60, %v83_v59  ;;  %v297_v0 = vpack.c.bf16 %v90_v62, %v88_v61  ;;  %v87_v1 = vld [vmem:[#allocation5 + $0x140] sm:$0xff]  ;;  %v89_v2 = vld [vmem:[#allocation5 + $0x150] sm:$0xff]  ;;  %v92_v3 = vld [vmem:[#allocation5 + $0x168] sm:$0xff] }
  0x36   :  { %272 = vmatpush1.bf16.msra.mxu0 %v271_v25  ;;  %340 = vmatpush1.bf16.msra.mxu1 %v271_v25  ;;  %v94_v4 = vld [vmem:[#allocation5 + $0x178] sm:$0xff]  ;;  %v299_v5 = vpack.c.bf16 %v89_v2, %v87_v1  ;;  %v91_v7 = vld [vmem:[#allocation5 + $0x160] sm:$0xff]  ;;  %v93_v8 = vld [vmem:[#allocation5 + $0x170] sm:$0xff] }
  0x37   :  { %274 = vmatprep.subr.bf16.mxu0 %v273_v26  ;;  %325 = vmatprep.subr.bf16.mxu1 %v273_v26  ;;  %v301_v6 = vpack.c.bf16 %v94_v4, %v92_v3  ;;  %v96_v9 = vld [vmem:[#allocation5 + $0x188] sm:$0xff]  ;;  %v98_v10 = vld [vmem:[#allocation5 + $0x198] sm:$0xff]  ;;  %v303_v11 = vpack.c.bf16 %v93_v8, %v91_v7  ;;  %v95_v13 = vld [vmem:[#allocation5 + $0x180] sm:$0xff] }
  0x38   :  { %v305_v12 = vpack.c.bf16 %v98_v10, %v96_v9  ;;  %v97_v14 = vld [vmem:[#allocation5 + $0x190] sm:$0xff]  ;;  %v100_v15 = vld [vmem:[#allocation5 + $0x1a8] sm:$0xff]  ;;  %v102_v16 = vld [vmem:[#allocation5 + $0x1b8] sm:$0xff] }
  0x39   :  { %v307_v17 = vpack.c.bf16 %v97_v14, %v95_v13  ;;  %v309_v18 = vpack.c.bf16 %v102_v16, %v100_v15  ;;  %v99_v19 = vld [vmem:[#allocation5 + $0x1a0] sm:$0xff]  ;;  %v101_v20 = vld [vmem:[#allocation5 + $0x1b0] sm:$0xff]  ;;  %v104_v21 = vld [vmem:[#allocation5 + $0x1c8] sm:$0xff] }
  0x3a   :  { %276 = vmatpush1.bf16.msra.mxu0 %v275_v31  ;;  %341 = vmatpush1.bf16.msra.mxu1 %v275_v31  ;;  %v106_v22 = vld [vmem:[#allocation5 + $0x1d8] sm:$0xff]  ;;  %v311_v23 = vpack.c.bf16 %v101_v20, %v99_v19  ;;  %v103_v25 = vld [vmem:[#allocation5 + $0x1c0] sm:$0xff]  ;;  %v105_v26 = vld [vmem:[#allocation5 + $0x1d0] sm:$0xff] }
  0x3b   :  { %278 = vmatprep.subr.bf16.mxu0 %v277_v32  ;;  %326 = vmatprep.subr.bf16.mxu1 %v277_v32  ;;  %v313_v24 = vpack.c.bf16 %v106_v22, %v104_v21  ;;  %v108_v27 = vld [vmem:[#allocation5 + $0x1e8] sm:$0xff]  ;;  %v110_v28 = vld [vmem:[#allocation5 + $0x1f8] sm:$0xff]  ;;  %v315_v29 = vpack.c.bf16 %v105_v26, %v103_v25  ;;  %v107_v31 = vld [vmem:[#allocation5 + $0x1e0] sm:$0xff] }
  0x3c   :  { %v317_v30 = vpack.c.bf16 %v110_v28, %v108_v27  ;;  %v109_v32 = vld [vmem:[#allocation5 + $0x1f0] sm:$0xff]  ;;  %v43_v34 = vld [vmem:[#allocation2] sm:$0xff] }
  0x3d   :  { %v319_v33 = vpack.c.bf16 %v109_v32, %v107_v31  ;;  %v45_v35 = vld [vmem:[#allocation2 + $0x10] sm:$0xff] }
  0x3e   :  { %280 = vmatpush1.bf16.msra.mxu0 %v279_v37  ;;  %342 = vmatpush1.bf16.msra.mxu1 %v279_v37  ;;  %v222_v37 = vshrl.u32 %v221_v36, 7 }
  0x3f   :  { %282 = vmatprep.subr.bf16.mxu0 %v281_v39  ;;  %327 = vmatprep.subr.bf16.mxu1 %v281_v39  ;;  %v219_v39 = vld [vmem:[%s505_s2] sm:$0x3] }
  0x40   :  { %v223_v38 = vsub.s32 0, %v222_v37  ;;  %v227_v40 = vsub.s32 1, %v222_v37 }
  0x42   :  { %284 = vmatpush1.bf16.msra.mxu0 %v283_v45  ;;  %343 = vmatpush1.bf16.msra.mxu1 %v283_v45  ;;  %v224_v41 = vrot.slane %v219_v39, %v223_v38  ;;  %v228_v42 = vrot.slane %v219_v39, %v227_v40 }
  0x43   :  { %286 = vmatprep.subr.bf16.mxu0 %v285_v46  ;;  %328 = vmatprep.subr.bf16.mxu1 %v285_v46 }
  0x46   :  { %288 = vmatpush1.bf16.msra.mxu0 %v287_v51  ;;  %344 = vmatpush1.bf16.msra.mxu1 %v287_v51 }
  0x47   :  { %290 = vmatprep.subr.bf16.mxu0 %v289_v52  ;;  %329 = vmatprep.subr.bf16.mxu1 %v289_v52 }
  0x4a   :  { %292 = vmatpush1.bf16.msra.mxu0 %v291_v57  ;;  %345 = vmatpush1.bf16.msra.mxu1 %v291_v57 }
  0x4b   :  { %294 = vmatprep.subr.bf16.mxu0 %v293_v58  ;;  %330 = vmatprep.subr.bf16.mxu1 %v293_v58 }
  0x4e   :  { %296 = vmatpush1.bf16.msra.mxu0 %v295_v63  ;;  %346 = vmatpush1.bf16.msra.mxu1 %v295_v63 }
  0x4f   :  { %298 = vmatprep.subr.bf16.mxu0 %v297_v0  ;;  %331 = vmatprep.subr.bf16.mxu1 %v297_v0 }
  0x52   :  { %300 = vmatpush1.bf16.msra.mxu0 %v299_v5  ;;  %347 = vmatpush1.bf16.msra.mxu1 %v299_v5 }
  0x53   :  { %302 = vmatprep.subr.bf16.mxu0 %v301_v6  ;;  %332 = vmatprep.subr.bf16.mxu1 %v301_v6 }
  0x56   :  { %304 = vmatpush1.bf16.msra.mxu0 %v303_v11  ;;  %348 = vmatpush1.bf16.msra.mxu1 %v303_v11 }
  0x57   :  { %306 = vmatprep.subr.bf16.mxu0 %v305_v12  ;;  %333 = vmatprep.subr.bf16.mxu1 %v305_v12 }
  0x5a   :  { %308 = vmatpush1.bf16.msra.mxu0 %v307_v17  ;;  %349 = vmatpush1.bf16.msra.mxu1 %v307_v17 }
  0x5b   :  { %310 = vmatprep.subr.bf16.mxu0 %v309_v18  ;;  %334 = vmatprep.subr.bf16.mxu1 %v309_v18 }
  0x5e   :  { %312 = vmatpush1.bf16.msra.mxu0 %v311_v23  ;;  %350 = vmatpush1.bf16.msra.mxu1 %v311_v23 }
  0x5f   :  { %314 = vmatprep.subr.bf16.mxu0 %v313_v24  ;;  %335 = vmatprep.subr.bf16.mxu1 %v313_v24 }
  0x62   :  { %316 = vmatpush1.bf16.msra.mxu0 %v315_v29  ;;  %351 = vmatpush1.bf16.msra.mxu1 %v315_v29 }
  0x63   :  { %318 = vmatprep.subr.bf16.mxu0 %v317_v30  ;;  %336 = vmatprep.subr.bf16.mxu1 %v317_v30 }
  0x66   :  { %320 = vmatpush1.bf16.msra.mxu0 %v319_v33  ;;  %352 = vmatpush1.bf16.msra.mxu1 %v319_v33 }
  0x69   :  { %176 = vmatmul.mubr.f32.vlgmr.msra.gmra.mrb[0].mxu0 %v43_v34  ;;  %182 = vmatmul.mubr.f32.vlgmr.msra.gmra.mrb[0].mxu1 %v45_v35 }
 0x13c   :  { %v177_v43 = vpop.f32.mrb[0].mxu0  ;;  %v183_v44 = vpop.f32.mrb[0].mxu1 }
 0x13d   :  { %v231_v45 = vadd.f32 %v224_v41, %v177_v43  ;;  %v233_v46 = vadd.f32 %v224_v41, %v183_v44  ;;  %v179_v47 = vpop.f32.mrb[1].mxu0  ;;  %v185_v48 = vpop.f32.mrb[1].mxu1 }
 0x13e   :  { %v232_v49 = vadd.f32 %v228_v42, %v179_v47  ;;  %v234_v50 = vadd.f32 %v228_v42, %v185_v48 }
 0x13f   :  { %235 = vst [vmem:[#allocation7] sm:$0xff] %v231_v45  ;;  %237 = vst [vmem:[#allocation7 + $0x10] sm:$0xff] %v233_v46 }
 0x140   :  { %236 = vst [vmem:[#allocation7 + $0x8] sm:$0xff] %v232_v49  ;;  %238 = vst [vmem:[#allocation7 + $0x18] sm:$0xff] %v234_v50 }
 0x141   :  { %413 = shalt.err (!%p410_p6)
}
 0x142   :  { %s414_s15 = scalar_lea.hbm %s506_s3, 512 }
 0x143   :  { %p415_p7 = scmp.ne.s32.totalorder %s506_s3, %s414_s15  ;;  %p418_p8 = scmp.lt.u32.totalorder %s414_s15, %s506_s3 }
 0x145   :  { %p420_p9 = pnand %p418_p8, %p415_p7 }
 0x147   :  { %423 = shalt.err (!%p420_p9)
}
 0x148   :  { %250 = dma.vmem_to_hbm [thread:$0]  %s245_s12, 512, %s506_s3, [#allocation4], %s431_s22, %s431_s22, %s432_s23  }
 0x149   :  { %428 = dma.done.wait [#allocation4], 512  }
 0x14a   :  { %429 = vsyncadd [#allocation4], 4294966784 }
 0x14b   :  { %254 = vsyncpa [#allocation3], 1 }
 0x14c   :  { %255 = vsyncpa [#allocation6], 1 }
 0x14d   :  { %256 = vsyncpa [#allocation4], 1 }

</bundles_post_ra>
